<compile_context>
chip_gen: v5e
topology: v5e:2x2
jax: 0.10.0
libtpu: 0.0.40
codegen_flags: <defaults>
</compile_context>

<pallas_src>
import jax
import jax.numpy as jnp
from jax.experimental import pallas as pl
from jax.experimental.pallas import tpu as pltpu


def _pos_embed_kernel(col_t_ref, row_t_ref, sel_col_ref, sel_row_ref, out_ref):
    # col_t_ref  : (F, W)   x/col embeddings, pre-transposed (channel-major)
    # row_t_ref  : (F, H)   y/row embeddings, pre-transposed (channel-major)
    # sel_col_ref: (W, HW)  one-hot, sel_col[w, h*W + w] = 1  (tile cols over rows)
    # sel_row_ref: (H, HW)  one-hot, sel_row[h, h*W + w] = 1  (repeat rows over cols)
    # out_ref    : (2F, HW) channel-major output; lane axis = flattened H*W
    f = col_t_ref.shape[0]

    # Channels [0, F): col_table[w, c] placed at every (h, w)  -> colT @ sel_col.
    out_ref[:f, :] = jnp.dot(
        col_t_ref[...], sel_col_ref[...],
        preferred_element_type=jnp.float32).astype(out_ref.dtype)

    # Channels [F, 2F): row_table[h, c] placed at every (h, w) -> rowT @ sel_row.
    out_ref[f:, :] = jnp.dot(
        row_t_ref[...], sel_row_ref[...],
        preferred_element_type=jnp.float32).astype(out_ref.dtype)


def position_embedding_learned(x, mask, row_table, col_table):
    """x: (B, C, H, W); mask unused (matches the PyTorch forward). Returns (B, 2F, H, W)."""
    del mask  # unused, as in the PyTorch forward
    B = x.shape[0]
    H, W = x.shape[-2], x.shape[-1]
    F = row_table.shape[-1]
    HW = H * W
    dtype = row_table.dtype

    if H > row_table.shape[0] or W > col_table.shape[0]:
        raise ValueError("H/W exceed the embedding tables (50 positions max)")

    # Tiny wrapper-side layout plumbing: slice first (so each block equals the
    # full array), then transpose to channel-major.
    col_t = col_table[:W].T                              # (F, W) == col_embed(arange(W)).T
    row_t = row_table[:H].T                              # (F, H) == row_embed(arange(H)).T

    # Constant one-hot lane-placement selectors (<= 50*2500*4 B each). The MXU
    # performs the cross-lane tile/repeat; no in-kernel transpose or rotates.
    lane = jnp.arange(HW, dtype=jnp.int32)
    sel_col = (lane[None, :] % W ==
               jnp.arange(W, dtype=jnp.int32)[:, None]).astype(dtype)   # (W, HW)
    sel_row = (lane[None, :] // W ==
               jnp.arange(H, dtype=jnp.int32)[:, None]).astype(dtype)   # (H, HW)

    pos_cm = pl.pallas_call(
        _pos_embed_kernel,
        out_shape=jax.ShapeDtypeStruct((2 * F, HW), dtype),
        in_specs=[pl.BlockSpec(memory_space=pltpu.MemorySpace.VMEM)] * 4,
        out_specs=pl.BlockSpec(memory_space=pltpu.MemorySpace.VMEM),
    )(col_t, row_t, sel_col, sel_row)

    # (2F, H*W) -> (2F, H, W) is a free contiguous reshape; the batch repeat is a
    # broadcast that downstream XLA consumers can fuse (result is batch-invariant).
    return jnp.broadcast_to(pos_cm.reshape(2 * F, H, W)[None], (B, 2 * F, H, W))


if __name__ == "__main__":
    key = jax.random.PRNGKey(0)
    k_row, k_col, k_x = jax.random.split(key, 3)

    num_pos_feats = 64          # 2F = 128 output channels (lane/sublane friendly)
    B, C, H, W = 2, 4, 16, 16

    # nn.Embedding(50, F) weights, nn.init.uniform_ -> U[0, 1). Snapped to
    # bf16-representable values so the one-hot MXU placement is bit-exact under
    # any f32-matmul emulation precision; for arbitrary f32 tables run under
    # jax.default_matmul_precision("highest") if bit-exactness matters.
    row_table = jax.random.uniform(k_row, (50, num_pos_feats), dtype=jnp.float32)
    col_table = jax.random.uniform(k_col, (50, num_pos_feats), dtype=jnp.float32)
    row_table = row_table.astype(jnp.bfloat16).astype(jnp.float32)
    col_table = col_table.astype(jnp.bfloat16).astype(jnp.float32)

    x = jax.random.normal(k_x, (B, C, H, W), dtype=jnp.float32)
    mask = jnp.zeros((B, H, W), dtype=jnp.bool_)   # unused, as in PyTorch forward

    pos = jax.block_until_ready(
        position_embedding_learned(x, mask, row_table, col_table))

    # Pure-JAX reference (mirrors the PyTorch cat / permute / repeat exactly).
    x_emb = col_table[:W]
    y_emb = row_table[:H]
    ref = jnp.concatenate(
        [jnp.broadcast_to(x_emb[None, :, :], (H, W, num_pos_feats)),
         jnp.broadcast_to(y_emb[:, None, :], (H, W, num_pos_feats))], axis=-1)
    ref = jnp.broadcast_to(jnp.transpose(ref, (2, 0, 1))[None],
                           (B, 2 * num_pos_feats, H, W))

    assert pos.shape == (B, 2 * num_pos_feats, H, W)
    assert pos.dtype == jnp.float32
    assert bool(jnp.allclose(pos, ref, rtol=1e-6, atol=1e-6))
    print("KERNEL_OK")
</pallas_src>

<mosaic_0001>
module attributes {stable_mosaic.version = 11 : i64} {
  func.func @_pos_embed_kernel(%arg0: memref<64x16xf32, #tpu.memory_space<vmem>>, %arg1: memref<64x16xf32, #tpu.memory_space<vmem>>, %arg2: memref<16x256xf32, #tpu.memory_space<vmem>>, %arg3: memref<16x256xf32, #tpu.memory_space<vmem>>, %arg4: memref<128x256xf32, #tpu.memory_space<vmem>>) attributes {dimension_semantics = [], scalar_prefetch = 0 : i64, scratch_operands = 0 : i64, tpu.core_type = #tpu.core_type<tc>} {
    %c0 = arith.constant 0 : index
    %c0_0 = arith.constant 0 : index
    %0 = vector.load %arg0[%c0, %c0_0] : memref<64x16xf32, #tpu.memory_space<vmem>>, vector<64x16xf32>
    %c0_1 = arith.constant 0 : index
    %c0_2 = arith.constant 0 : index
    %1 = vector.load %arg2[%c0_1, %c0_2] : memref<16x256xf32, #tpu.memory_space<vmem>>, vector<16x256xf32>
    %cst = arith.constant dense<0.000000e+00> : vector<64x256xf32>
    %2 = tpu.matmul %0, %1, %cst {dimension_numbers = #tpu.dot_dimension_numbers<[1], [0], [0], [1], [0, 0, 1, 1], [], []>} : vector<64x16xf32>, vector<16x256xf32>, vector<64x256xf32> -> vector<64x256xf32>
    %c0_3 = arith.constant 0 : index
    %c0_4 = arith.constant 0 : index
    %3 = vector.load %arg4[%c0_3, %c0_4] : memref<128x256xf32, #tpu.memory_space<vmem>>, vector<64x256xf32>
    tpu.vector_store %arg4[%c0_3, %c0_4], %2 {strides = array<i32>} : memref<128x256xf32, #tpu.memory_space<vmem>>, vector<64x256xf32>,
    %c0_5 = arith.constant 0 : index
    %c0_6 = arith.constant 0 : index
    %4 = vector.load %arg1[%c0_5, %c0_6] : memref<64x16xf32, #tpu.memory_space<vmem>>, vector<64x16xf32>
    %c0_7 = arith.constant 0 : index
    %c0_8 = arith.constant 0 : index
    %5 = vector.load %arg3[%c0_7, %c0_8] : memref<16x256xf32, #tpu.memory_space<vmem>>, vector<16x256xf32>
    %cst_9 = arith.constant dense<0.000000e+00> : vector<64x256xf32>
    %6 = tpu.matmul %4, %5, %cst_9 {dimension_numbers = #tpu.dot_dimension_numbers<[1], [0], [0], [1], [0, 0, 1, 1], [], []>} : vector<64x16xf32>, vector<16x256xf32>, vector<64x256xf32> -> vector<64x256xf32>
    %c64 = arith.constant 64 : index
    %c0_10 = arith.constant 0 : index
    %7 = vector.load %arg4[%c64, %c0_10] : memref<128x256xf32, #tpu.memory_space<vmem>>, vector<64x256xf32>
    tpu.vector_store %arg4[%c64, %c0_10], %6 {strides = array<i32>} : memref<128x256xf32, #tpu.memory_space<vmem>>, vector<64x256xf32>,
    return
  }
}

</mosaic_0001>

<bundles_post_ra>
// kernel: tpu_custom_call.1
= control target key start
LH: loop header
LB: loop body
LE: loop exit
PB: predicated region body
PF: predicated region fallthrough
CT: control target
= control target key end

     0   :  { %vm30_vm0 = vcmask 130048   ;;  %s501_s0 = inlined_call_operand.vmem [shape: f32[64,16], index: 0, kind: input, shape index: {}]   ;;  %s502_s1 = inlined_call_operand.vmem [shape: f32[64,16], index: 1, kind: input, shape index: {}]   ;;  %s503_s2 = inlined_call_operand.vmem [shape: f32[16,256], index: 2, kind: input, shape index: {}]   ;;  %s504_s3 = inlined_call_operand.vmem [shape: f32[16,256], index: 3, kind: input, shape index: {}]   ;;  %s505_s4 = inlined_call_operand.hbm [shape: f32[128,256], index: 4, kind: output, shape index: {}]  }
   0x1   :  { %v163_v0 = vld [vmem:[%s504_s3 + $0x10] sm:$0xff]  ;;  %v164_v1 = vld [vmem:[%s504_s3 + $0x18] sm:$0xff]  ;;  %v161_v2 = vld [vmem:[%s504_s3] sm:$0xff] }
   0x2   :  { %203 = vmatpush.msra.mxu2 %v163_v0  ;;  %244 = vmatpush.msra.mxu3 %v164_v1  ;;  %v162_v3 = vld [vmem:[%s504_s3 + $0x8] sm:$0xff]  ;;  %v153_v4 = vld [vmem:[%s502_s1] sm:$0xff]  ;;  %v28_v5 = vld [vmem:[%s503_s2 + $0x10] sm:$0xff] }
   0x3   :  { %69 = vmatpush.msra.mxu0 %v28_v5  ;;  %v29_v6 = vld [vmem:[%s503_s2 + $0x18] sm:$0xff]  ;;  %v26_v7 = vld [vmem:[%s503_s2] sm:$0xff]  ;;  %v27_v9 = vld [vmem:[%s503_s2 + $0x8] sm:$0xff] }
   0x4   :  { %204 = vmatpush.msra.mxu2 %v161_v2  ;;  %245 = vmatpush.msra.mxu3 %v162_v3  ;;  %v18_v8 = vld [vmem:[%s501_s0] sm:$0xff] }
   0x5   :  { %321 = vmatmul.msk.f32.vlgmr.msra.gmra.mxu2 %vm30_vm0, %v153_v4  ;;  %329 = vmatmul.msk.f32.vlgmr.msra.gmra.mxu3 %vm30_vm0, %v153_v4 }
   0x6   :  { %110 = vmatpush.msra.mxu1 %v29_v6  ;;  %70 = vmatpush.msra.mxu0 %v26_v7 }
   0x7   :  { %305 = vmatmul.msk.f32.vlgmr.msra.gmra.mxu0 %vm30_vm0, %v18_v8 }
   0x8   :  { %9 = vsyncpa [#allocation3], 0  ;;  %111 = vmatpush.msra.mxu1 %v27_v9  ;;  %v154_v10 = vld [vmem:[%s502_s1 + $0x8] sm:$0xff]  ;;  %v155_v12 = vld [vmem:[%s502_s1 + $0x10] sm:$0xff]  ;;  %s293_s10 = sshll.u32 %s505_s4, 4  ;;  %s367_s11 = smov 256   ;;  %s294_s10 = int_to_ptr.hbm [resolvable:$true] %s293_s10 }
   0x9   :  { %313 = vmatmul.msk.f32.vlgmr.msra.gmra.mxu1 %vm30_vm0, %v18_v8  ;;  %v19_v11 = vld [vmem:[%s501_s0 + $0x8] sm:$0xff]  ;;  %v20_v13 = vld [vmem:[%s501_s0 + $0x10] sm:$0xff]  ;;  %v156_v14 = vld [vmem:[%s502_s1 + $0x18] sm:$0xff]  ;;  %s368_s2 = smov 16  }
   0xa   :  { %v21_v15 = vld [vmem:[%s501_s0 + $0x18] sm:$0xff]  ;;  %v157_v16 = vld [vmem:[%s502_s1 + $0x20] sm:$0xff]  ;;  %v158_v18 = vld [vmem:[%s502_s1 + $0x28] sm:$0xff] }
   0xb   :  { %v22_v17 = vld [vmem:[%s501_s0 + $0x20] sm:$0xff]  ;;  %v23_v19 = vld [vmem:[%s501_s0 + $0x28] sm:$0xff]  ;;  %v159_v20 = vld [vmem:[%s502_s1 + $0x30] sm:$0xff] }
   0xc   :  { %v24_v21 = vld [vmem:[%s501_s0 + $0x30] sm:$0xff]  ;;  %v160_v22 = vld [vmem:[%s502_s1 + $0x38] sm:$0xff] }
   0xd   :  { %322 = vmatmul.msk.f32.gmra.mxu2 %vm30_vm0, %v154_v10  ;;  %330 = vmatmul.msk.f32.gmra.mxu3 %vm30_vm0, %v154_v10  ;;  %v25_v23 = vld [vmem:[%s501_s0 + $0x38] sm:$0xff]  ;;  %s366_s0 = smov [#allocation2]  }
   0xe   :  { %s291_s1 = sshll.u32 %s366_s0, 4  ;;  %s292_s1 = int_to_ptr.vmem [resolvable:$true] %s291_s1 }
   0xf   :  { %306 = vmatmul.msk.f32.gmra.mxu0 %vm30_vm0, %v19_v11 }
  0x11   :  { %314 = vmatmul.msk.f32.gmra.mxu1 %vm30_vm0, %v19_v11 }
  0x15   :  { %323 = vmatmul.msk.f32.gmra.mxu2 %vm30_vm0, %v155_v12  ;;  %331 = vmatmul.msk.f32.gmra.mxu3 %vm30_vm0, %v155_v12 }
  0x17   :  { %307 = vmatmul.msk.f32.gmra.mxu0 %vm30_vm0, %v20_v13 }
  0x19   :  { %315 = vmatmul.msk.f32.gmra.mxu1 %vm30_vm0, %v20_v13 }
  0x1d   :  { %324 = vmatmul.msk.f32.gmra.mxu2 %vm30_vm0, %v156_v14  ;;  %332 = vmatmul.msk.f32.gmra.mxu3 %vm30_vm0, %v156_v14 }
  0x1f   :  { %308 = vmatmul.msk.f32.gmra.mxu0 %vm30_vm0, %v21_v15 }
  0x21   :  { %316 = vmatmul.msk.f32.gmra.mxu1 %vm30_vm0, %v21_v15 }
  0x25   :  { %325 = vmatmul.msk.f32.gmra.mxu2 %vm30_vm0, %v157_v16  ;;  %333 = vmatmul.msk.f32.gmra.mxu3 %vm30_vm0, %v157_v16 }
  0x27   :  { %309 = vmatmul.msk.f32.gmra.mxu0 %vm30_vm0, %v22_v17 }
  0x29   :  { %317 = vmatmul.msk.f32.gmra.mxu1 %vm30_vm0, %v22_v17 }
  0x2d   :  { %326 = vmatmul.msk.f32.gmra.mxu2 %vm30_vm0, %v158_v18  ;;  %334 = vmatmul.msk.f32.gmra.mxu3 %vm30_vm0, %v158_v18 }
  0x2f   :  { %310 = vmatmul.msk.f32.gmra.mxu0 %vm30_vm0, %v23_v19 }
  0x31   :  { %318 = vmatmul.msk.f32.gmra.mxu1 %vm30_vm0, %v23_v19 }
  0x35   :  { %327 = vmatmul.msk.f32.gmra.mxu2 %vm30_vm0, %v159_v20  ;;  %335 = vmatmul.msk.f32.gmra.mxu3 %vm30_vm0, %v159_v20 }
  0x37   :  { %311 = vmatmul.msk.f32.gmra.mxu0 %vm30_vm0, %v24_v21 }
  0x39   :  { %319 = vmatmul.msk.f32.gmra.mxu1 %vm30_vm0, %v24_v21 }
  0x3d   :  { %328 = vmatmul.msk.f32.gmra.mxu2 %vm30_vm0, %v160_v22  ;;  %336 = vmatmul.msk.f32.gmra.mxu3 %vm30_vm0, %v160_v22 }
  0x3f   :  { %312 = vmatmul.msk.f32.gmra.mxu0 %vm30_vm0, %v25_v23 }
  0x41   :  { %320 = vmatmul.msk.f32.gmra.mxu1 %vm30_vm0, %v25_v23 }
  0x84   :  { %v72_v24 = vpop.f32.mrf.mxu0 }
  0x85   :  { %137 = vst [vmem:[#allocation2] sm:$0xff] %v72_v24 }
  0x86   :  { %v113_v25 = vpop.f32.mrf.mxu1 }
  0x87   :  { %138 = vst [vmem:[#allocation2 + $0x8] sm:$0xff] %v113_v25 }
  0x88   :  { %v206_v26 = vpop.f32.mrf.mxu2  ;;  %v247_v27 = vpop.f32.mrf.mxu3 }
  0x89   :  { %271 = vst [vmem:[#allocation2 + $0x80] sm:$0xff] %v206_v26 }
  0x8a   :  { %272 = vst [vmem:[#allocation2 + $0x88] sm:$0xff] %v247_v27 }
  0x8c   :  { %v75_v28 = vpop.f32.mrf.mxu0 }
  0x8d   :  { %139 = vst [vmem:[#allocation2 + $0x10] sm:$0xff] %v75_v28 }
  0x8e   :  { %v116_v29 = vpop.f32.mrf.mxu1 }
  0x8f   :  { %140 = vst [vmem:[#allocation2 + $0x18] sm:$0xff] %v116_v29 }
  0x90   :  { %v209_v30 = vpop.f32.mrf.mxu2  ;;  %v250_v31 = vpop.f32.mrf.mxu3 }
  0x91   :  { %273 = vst [vmem:[#allocation2 + $0x90] sm:$0xff] %v209_v30 }
  0x92   :  { %274 = vst [vmem:[#allocation2 + $0x98] sm:$0xff] %v250_v31 }
  0x94   :  { %v78_v32 = vpop.f32.mrf.mxu0 }
  0x95   :  { %141 = vst [vmem:[#allocation2 + $0x20] sm:$0xff] %v78_v32 }
  0x96   :  { %v119_v33 = vpop.f32.mrf.mxu1 }
  0x97   :  { %142 = vst [vmem:[#allocation2 + $0x28] sm:$0xff] %v119_v33 }
  0x98   :  { %v212_v34 = vpop.f32.mrf.mxu2  ;;  %v253_v35 = vpop.f32.mrf.mxu3 }
  0x99   :  { %275 = vst [vmem:[#allocation2 + $0xa0] sm:$0xff] %v212_v34 }
  0x9a   :  { %276 = vst [vmem:[#allocation2 + $0xa8] sm:$0xff] %v253_v35 }
  0x9c   :  { %v81_v36 = vpop.f32.mrf.mxu0 }
  0x9d   :  { %143 = vst [vmem:[#allocation2 + $0x30] sm:$0xff] %v81_v36 }
  0x9e   :  { %v122_v37 = vpop.f32.mrf.mxu1 }
  0x9f   :  { %144 = vst [vmem:[#allocation2 + $0x38] sm:$0xff] %v122_v37 }
  0xa0   :  { %v215_v38 = vpop.f32.mrf.mxu2  ;;  %v256_v39 = vpop.f32.mrf.mxu3 }
  0xa1   :  { %277 = vst [vmem:[#allocation2 + $0xb0] sm:$0xff] %v215_v38 }
  0xa2   :  { %278 = vst [vmem:[#allocation2 + $0xb8] sm:$0xff] %v256_v39 }
  0xa4   :  { %v84_v40 = vpop.f32.mrf.mxu0 }
  0xa5   :  { %145 = vst [vmem:[#allocation2 + $0x40] sm:$0xff] %v84_v40 }
  0xa6   :  { %v125_v41 = vpop.f32.mrf.mxu1 }
  0xa7   :  { %146 = vst [vmem:[#allocation2 + $0x48] sm:$0xff] %v125_v41 }
  0xa8   :  { %v218_v42 = vpop.f32.mrf.mxu2  ;;  %v259_v43 = vpop.f32.mrf.mxu3 }
  0xa9   :  { %279 = vst [vmem:[#allocation2 + $0xc0] sm:$0xff] %v218_v42 }
  0xaa   :  { %280 = vst [vmem:[#allocation2 + $0xc8] sm:$0xff] %v259_v43 }
  0xac   :  { %v87_v44 = vpop.f32.mrf.mxu0 }
  0xad   :  { %147 = vst [vmem:[#allocation2 + $0x50] sm:$0xff] %v87_v44 }
  0xae   :  { %v128_v45 = vpop.f32.mrf.mxu1 }
  0xaf   :  { %148 = vst [vmem:[#allocation2 + $0x58] sm:$0xff] %v128_v45 }
  0xb0   :  { %v221_v46 = vpop.f32.mrf.mxu2  ;;  %v262_v47 = vpop.f32.mrf.mxu3 }
  0xb1   :  { %281 = vst [vmem:[#allocation2 + $0xd0] sm:$0xff] %v221_v46 }
  0xb2   :  { %282 = vst [vmem:[#allocation2 + $0xd8] sm:$0xff] %v262_v47 }
  0xb4   :  { %v90_v48 = vpop.f32.mrf.mxu0 }
  0xb5   :  { %149 = vst [vmem:[#allocation2 + $0x60] sm:$0xff] %v90_v48 }
  0xb6   :  { %v131_v49 = vpop.f32.mrf.mxu1 }
  0xb7   :  { %150 = vst [vmem:[#allocation2 + $0x68] sm:$0xff] %v131_v49 }
  0xb8   :  { %v224_v50 = vpop.f32.mrf.mxu2  ;;  %v265_v51 = vpop.f32.mrf.mxu3 }
  0xb9   :  { %283 = vst [vmem:[#allocation2 + $0xe0] sm:$0xff] %v224_v50 }
  0xba   :  { %284 = vst [vmem:[#allocation2 + $0xe8] sm:$0xff] %v265_v51 }
  0xbc   :  { %v93_v52 = vpop.f32.mrf.mxu0 }
  0xbd   :  { %151 = vst [vmem:[#allocation2 + $0x70] sm:$0xff] %v93_v52 }
  0xbe   :  { %v134_v53 = vpop.f32.mrf.mxu1 }
  0xbf   :  { %152 = vst [vmem:[#allocation2 + $0x78] sm:$0xff] %v134_v53 }
  0xc0   :  { %v227_v54 = vpop.f32.mrf.mxu2  ;;  %v268_v55 = vpop.f32.mrf.mxu3 }
  0xc1   :  { %285 = vst [vmem:[#allocation2 + $0xf0] sm:$0xff] %v227_v54 }
  0xc2   :  { %286 = vst [vmem:[#allocation2 + $0xf8] sm:$0xff] %v268_v55 }
  0xc3   :  { %299 = dma.vmem_to_hbm [thread:$0]  %s292_s1, 4096, %s294_s10, [#allocation3], %s367_s11, %s367_s11, %s368_s2  }
  0xc4   :  { %364 = dma.done.wait [#allocation3], 4096  }
  0xc5   :  { %365 = vsyncadd [#allocation3], 4294963200 }
  0xc6   :  { %304 = vsyncpa [#allocation3], 1 }

</bundles_post_ra>
